<compile_context>
chip_gen: v7x
topology: tpu7x:2x2x1
jax: 0.10.0
libtpu: 0.0.40
codegen_flags: <defaults>
</compile_context>

<pallas_src>
import jax
import jax.numpy as jnp
from jax.experimental import pallas as pl
from jax.experimental.pallas import tpu as pltpu


def basic_block_kernel(x_ref, cond_ref,
                       w0_ref, w1_ref, w2_ref, wc_ref,
                       b_ref, o_ref):
    x = x_ref[...]                                    # [T, PACK*32] f32 (packed batch rows)
    b0 = b_ref[0:1, :]
    b1 = b_ref[1:2, :]
    b2 = b_ref[2:3, :]
    bc = b_ref[3:4, :]

    # Layer 0: CLinear(32->32), no cond, ReLU   (PACK-way block-diag weights, bf16 into MXU)
    h = jnp.dot(x.astype(jnp.bfloat16), w0_ref[...],
                preferred_element_type=jnp.float32) + b0
    h = jnp.maximum(h, 0.0)

    # Layer 1: CLinear(32->32), no cond, ReLU
    h = jnp.dot(h.astype(jnp.bfloat16), w1_ref[...],
                preferred_element_type=jnp.float32) + b1
    h = jnp.maximum(h, 0.0)

    # Layer 2 (z = h @ W2 + b2) and conditional net (g = cond @ Wc + bc) as two
    # separate single-tile MXU pushes -- no lane concat, no zero-padded weights.
    z = jnp.dot(h.astype(jnp.bfloat16), w2_ref[...],
                preferred_element_type=jnp.float32) + b2
    g = jnp.dot(cond_ref[...], wc_ref[...],
                preferred_element_type=jnp.float32) + bc

    # GLU(cat([z,g],1),1) == z*sigmoid(g);  z + z*sigmoid(g) == z*(1+sigmoid(g))
    # TODO(synk): BatchNorm1d path (batch_norm=True) not implemented; this
    # instance was constructed with batch_norm=False (identity).
    o_ref[...] = x + jnp.maximum(z * (1.0 + jax.nn.sigmoid(g)), 0.0)


def _default_pack():
    """PACK=8 fills v6e/v7x 256x256 MXUs; PACK=4 for v5e (128x128 MXU) and older."""
    try:
        kind = jax.devices()[0].device_kind.lower()
    except Exception:
        return 4
    if "v6" in kind or "v7" in kind:
        return 8
    return 4


def _is_v7x():
    try:
        return "v7" in jax.devices()[0].device_kind.lower()
    except Exception:
        return False


def _default_tile_rows(bp, is_v7x):
    """Few, fat tiles. On v7x ensure >=2 equal tiles so both TensorCores are used."""
    cap = 1024
    if is_v7x and bp % 2 == 0 and (bp // 2) % 8 == 0:
        t = bp // 2
        while t > cap and t % 2 == 0 and (t // 2) % 8 == 0:
            t //= 2
        return t
    if bp <= 2 * cap:
        return bp
    for t in range(cap, 7, -8):           # biggest multiple-of-8 divisor <= cap
        if bp % t == 0:
            return t
    return bp


def pack_params(params, pack):
    """PACK-way block-diagonal bf16 weights + one stacked (4, pack*out) f32 bias operand."""
    f32 = jnp.float32
    eye = jnp.eye(pack, dtype=f32)

    def blkdiag(w):                       # [K, N] -> [pack*K, pack*N]
        return jnp.kron(eye, w)

    biases = jnp.concatenate(
        [jnp.tile(params["b0"], (1, pack)),
         jnp.tile(params["b1"], (1, pack)),
         jnp.tile(params["b2"], (1, pack)),
         jnp.tile(params["bc"], (1, pack))], axis=0)          # (4, pack*out)

    return {
        "w0": blkdiag(params["w0"]).astype(jnp.bfloat16),     # (pack*32, pack*32)
        "w1": blkdiag(params["w1"]).astype(jnp.bfloat16),
        "w2": blkdiag(params["w2"]).astype(jnp.bfloat16),
        "wc": blkdiag(params["wc"]).astype(jnp.bfloat16),     # (pack*16, pack*32)
        "b": biases.astype(f32),
    }


def basic_block_forward(x, cond, params, *, pack=None, tile_rows=None):
    B, D = x.shape
    Dc = cond.shape[1]
    if pack is None:
        pack = _default_pack()

    # Pad ragged batches to a multiple of the lane-pack factor (sliced off below).
    pad = (-B) % pack
    if pad:
        x = jnp.concatenate([x, jnp.zeros((pad, D), x.dtype)], axis=0)
        cond = jnp.concatenate([cond, jnp.zeros((pad, Dc), cond.dtype)], axis=0)
    Bt = B + pad
    Bp = Bt // pack

    pp = pack_params(params, pack)
    x_p = x.reshape(Bp, pack * D).astype(jnp.float32)          # lane-dense f32
    cond_p = cond.reshape(Bp, pack * Dc).astype(jnp.bfloat16)  # lane-dense bf16

    if tile_rows is None:
        tile_rows = _default_tile_rows(Bp, _is_v7x())
    assert Bp % tile_rows == 0, "packed batch must be divisible by the row tile"
    grid = (Bp // tile_rows,)

    row_tile = lambda i: (i, 0)     # batch-tiled operands
    resident = lambda i: (0, 0)     # parameters stay VMEM-resident across the grid

    # Advisory cost hint for XLA scheduling around the custom call.
    logical_flops = 2 * Bt * (params["w0"].size + params["w1"].size
                              + params["w2"].size + params["wc"].size)
    bytes_accessed = (x_p.size * 4 + cond_p.size * 2 + Bp * pack * D * 4
                      + sum(pp[k].size * 2 for k in ("w0", "w1", "w2", "wc"))
                      + pp["b"].size * 4)
    cost = pl.CostEstimate(flops=logical_flops,
                           transcendentals=Bt * D,
                           bytes_accessed=bytes_accessed)

    out_p = pl.pallas_call(
        basic_block_kernel,
        out_shape=jax.ShapeDtypeStruct((Bp, pack * D), jnp.float32),
        grid=grid,
        in_specs=[
            pl.BlockSpec((tile_rows, pack * D), row_tile),
            pl.BlockSpec((tile_rows, pack * Dc), row_tile),
            pl.BlockSpec(pp["w0"].shape, resident),
            pl.BlockSpec(pp["w1"].shape, resident),
            pl.BlockSpec(pp["w2"].shape, resident),
            pl.BlockSpec(pp["wc"].shape, resident),
            pl.BlockSpec(pp["b"].shape, resident),
        ],
        out_specs=pl.BlockSpec((tile_rows, pack * D), row_tile),
        compiler_params=pltpu.CompilerParams(
            dimension_semantics=("parallel",)),   # shards batch tiles across TCs on v7x
        cost_estimate=cost,
    )(x_p, cond_p, pp["w0"], pp["w1"], pp["w2"], pp["wc"], pp["b"])

    out = out_p.reshape(Bt, D)
    return out[:B] if pad else out


def reference_forward(x, cond, params):
    h = jnp.maximum(x @ params["w0"] + params["b0"], 0.0)
    h = jnp.maximum(h @ params["w1"] + params["b1"], 0.0)
    z = h @ params["w2"] + params["b2"]
    g = cond @ params["wc"] + params["bc"]
    z = z + z * jax.nn.sigmoid(g)
    z = jnp.maximum(z, 0.0)
    return x + z


def init_params(key, in_dim, n_nodes, out_dim, cond_dim):
    ks = jax.random.split(key, 8)
    s = 0.1
    return {
        "w0": s * jax.random.normal(ks[0], (in_dim, n_nodes), jnp.float32),
        "b0": s * jax.random.normal(ks[1], (1, n_nodes), jnp.float32),
        "w1": s * jax.random.normal(ks[2], (n_nodes, n_nodes), jnp.float32),
        "b1": s * jax.random.normal(ks[3], (1, n_nodes), jnp.float32),
        "w2": s * jax.random.normal(ks[4], (n_nodes, out_dim), jnp.float32),
        "b2": s * jax.random.normal(ks[5], (1, out_dim), jnp.float32),
        "wc": s * jax.random.normal(ks[6], (cond_dim, out_dim), jnp.float32),
        "bc": s * jax.random.normal(ks[7], (1, out_dim), jnp.float32),
    }


if __name__ == "__main__":
    B, IN_DIM, N_NODES, OUT_DIM, COND_DIM = 256, 32, 32, 32, 16

    key = jax.random.PRNGKey(0)
    kx, kc, kp = jax.random.split(key, 3)
    x = jax.random.normal(kx, (B, IN_DIM), jnp.float32)
    cond = jax.random.normal(kc, (B, COND_DIM), jnp.float32)
    params = init_params(kp, IN_DIM, N_NODES, OUT_DIM, COND_DIM)

    out = basic_block_forward(x, cond, params)
    out = jax.block_until_ready(out)

    ref = reference_forward(x, cond, params)
    assert out.shape == (B, OUT_DIM)
    # bf16 MXU operands -> loosened tolerance vs the f32 reference (intentional
    # precision trade; keep matmuls in f32 if bit-closer parity is required).
    assert jnp.allclose(out, ref, atol=2e-2, rtol=2e-2), float(jnp.max(jnp.abs(out - ref)))

    print("KERNEL_OK")
</pallas_src>

<mosaic_0001>
module attributes {stable_mosaic.version = 11 : i64} {
  func.func @basic_block_kernel(%arg0: i32, %arg1: memref<64x128xf32, #tpu.memory_space<vmem>>, %arg2: memref<64x64xbf16, #tpu.memory_space<vmem>>, %arg3: memref<128x128xbf16, #tpu.memory_space<vmem>>, %arg4: memref<128x128xbf16, #tpu.memory_space<vmem>>, %arg5: memref<128x128xbf16, #tpu.memory_space<vmem>>, %arg6: memref<64x128xbf16, #tpu.memory_space<vmem>>, %arg7: memref<4x128xf32, #tpu.memory_space<vmem>>, %arg8: memref<64x128xf32, #tpu.memory_space<vmem>>) attributes {dimension_semantics = [#tpu.dimension_semantics<parallel>], iteration_bounds = array<i64: 1>, scalar_prefetch = 0 : i64, scratch_operands = 0 : i64, tpu.core_type = #tpu.core_type<tc>, window_params = [{transform_indices = @transform_0, window_bounds = array<i64: 64, 128>}, {transform_indices = @transform_1, window_bounds = array<i64: 64, 64>}, {pipeline_mode = #tpu.pipeline_mode<synchronous>, transform_indices = @transform_2, window_bounds = array<i64: 128, 128>}, {pipeline_mode = #tpu.pipeline_mode<synchronous>, transform_indices = @transform_3, window_bounds = array<i64: 128, 128>}, {pipeline_mode = #tpu.pipeline_mode<synchronous>, transform_indices = @transform_4, window_bounds = array<i64: 128, 128>}, {pipeline_mode = #tpu.pipeline_mode<synchronous>, transform_indices = @transform_5, window_bounds = array<i64: 64, 128>}, {pipeline_mode = #tpu.pipeline_mode<synchronous>, transform_indices = @transform_6, window_bounds = array<i64: 4, 128>}, {transform_indices = @transform_7, window_bounds = array<i64: 64, 128>}]} {
    %c0 = arith.constant 0 : index
    %c0_0 = arith.constant 0 : index
    %0 = vector.load %arg1[%c0, %c0_0] : memref<64x128xf32, #tpu.memory_space<vmem>>, vector<64x128xf32>
    %c0_1 = arith.constant 0 : index
    %c0_2 = arith.constant 0 : index
    %1 = vector.load %arg7[%c0_1, %c0_2] : memref<4x128xf32, #tpu.memory_space<vmem>>, vector<1x128xf32>
    %c1 = arith.constant 1 : index
    %c0_3 = arith.constant 0 : index
    %2 = vector.load %arg7[%c1, %c0_3] : memref<4x128xf32, #tpu.memory_space<vmem>>, vector<1x128xf32>
    %c2 = arith.constant 2 : index
    %c0_4 = arith.constant 0 : index
    %3 = vector.load %arg7[%c2, %c0_4] : memref<4x128xf32, #tpu.memory_space<vmem>>, vector<1x128xf32>
    %c3 = arith.constant 3 : index
    %c0_5 = arith.constant 0 : index
    %4 = vector.load %arg7[%c3, %c0_5] : memref<4x128xf32, #tpu.memory_space<vmem>>, vector<1x128xf32>
    %5 = arith.truncf %0 : vector<64x128xf32> to vector<64x128xbf16>
    %c0_6 = arith.constant 0 : index
    %c0_7 = arith.constant 0 : index
    %6 = vector.load %arg3[%c0_6, %c0_7] : memref<128x128xbf16, #tpu.memory_space<vmem>>, vector<128x128xbf16>
    %cst = arith.constant dense<0.000000e+00> : vector<64x128xf32>
    %7 = tpu.matmul %5, %6, %cst {dimension_numbers = #tpu.dot_dimension_numbers<[1], [0], [0], [1], [0, 0, 1, 1], [], []>} : vector<64x128xbf16>, vector<128x128xbf16>, vector<64x128xf32> -> vector<64x128xf32>
    %8 = vector.broadcast %1 : vector<1x128xf32> to vector<64x128xf32>
    %9 = arith.addf %7, %8 : vector<64x128xf32>
    %cst_8 = arith.constant 0.000000e+00 : f32
    %10 = vector.broadcast %cst_8 : f32 to vector<64x128xf32>
    %11 = arith.maximumf %9, %10 : vector<64x128xf32>
    %12 = arith.truncf %11 : vector<64x128xf32> to vector<64x128xbf16>
    %c0_9 = arith.constant 0 : index
    %c0_10 = arith.constant 0 : index
    %13 = vector.load %arg4[%c0_9, %c0_10] : memref<128x128xbf16, #tpu.memory_space<vmem>>, vector<128x128xbf16>
    %cst_11 = arith.constant dense<0.000000e+00> : vector<64x128xf32>
    %14 = tpu.matmul %12, %13, %cst_11 {dimension_numbers = #tpu.dot_dimension_numbers<[1], [0], [0], [1], [0, 0, 1, 1], [], []>} : vector<64x128xbf16>, vector<128x128xbf16>, vector<64x128xf32> -> vector<64x128xf32>
    %15 = vector.broadcast %2 : vector<1x128xf32> to vector<64x128xf32>
    %16 = arith.addf %14, %15 : vector<64x128xf32>
    %cst_12 = arith.constant 0.000000e+00 : f32
    %17 = vector.broadcast %cst_12 : f32 to vector<64x128xf32>
    %18 = arith.maximumf %16, %17 : vector<64x128xf32>
    %19 = arith.truncf %18 : vector<64x128xf32> to vector<64x128xbf16>
    %c0_13 = arith.constant 0 : index
    %c0_14 = arith.constant 0 : index
    %20 = vector.load %arg5[%c0_13, %c0_14] : memref<128x128xbf16, #tpu.memory_space<vmem>>, vector<128x128xbf16>
    %cst_15 = arith.constant dense<0.000000e+00> : vector<64x128xf32>
    %21 = tpu.matmul %19, %20, %cst_15 {dimension_numbers = #tpu.dot_dimension_numbers<[1], [0], [0], [1], [0, 0, 1, 1], [], []>} : vector<64x128xbf16>, vector<128x128xbf16>, vector<64x128xf32> -> vector<64x128xf32>
    %22 = vector.broadcast %3 : vector<1x128xf32> to vector<64x128xf32>
    %23 = arith.addf %21, %22 : vector<64x128xf32>
    %c0_16 = arith.constant 0 : index
    %c0_17 = arith.constant 0 : index
    %24 = vector.load %arg2[%c0_16, %c0_17] : memref<64x64xbf16, #tpu.memory_space<vmem>>, vector<64x64xbf16>
    %c0_18 = arith.constant 0 : index
    %c0_19 = arith.constant 0 : index
    %25 = vector.load %arg6[%c0_18, %c0_19] : memref<64x128xbf16, #tpu.memory_space<vmem>>, vector<64x128xbf16>
    %cst_20 = arith.constant dense<0.000000e+00> : vector<64x128xf32>
    %26 = tpu.matmul %24, %25, %cst_20 {dimension_numbers = #tpu.dot_dimension_numbers<[1], [0], [0], [1], [0, 0, 1, 1], [], []>} : vector<64x64xbf16>, vector<64x128xbf16>, vector<64x128xf32> -> vector<64x128xf32>
    %27 = vector.broadcast %4 : vector<1x128xf32> to vector<64x128xf32>
    %28 = arith.addf %26, %27 : vector<64x128xf32>
    %29 = arith.negf %28 : vector<64x128xf32>
    %30 = math.exp %29 : vector<64x128xf32>
    %cst_21 = arith.constant 1.000000e+00 : f32
    %31 = vector.broadcast %cst_21 : f32 to vector<64x128xf32>
    %32 = arith.addf %31, %30 : vector<64x128xf32>
    %33 = arith.divf %31, %32 : vector<64x128xf32>
    %cst_22 = arith.constant 1.000000e+00 : f32
    %34 = vector.broadcast %cst_22 : f32 to vector<64x128xf32>
    %35 = arith.addf %34, %33 : vector<64x128xf32>
    %36 = arith.mulf %23, %35 : vector<64x128xf32>
    %cst_23 = arith.constant 0.000000e+00 : f32
    %37 = vector.broadcast %cst_23 : f32 to vector<64x128xf32>
    %38 = arith.maximumf %36, %37 : vector<64x128xf32>
    %39 = arith.addf %0, %38 : vector<64x128xf32>
    %c0_24 = arith.constant 0 : index
    %c0_25 = arith.constant 0 : index
    %40 = vector.load %arg8[%c0_24, %c0_25] : memref<64x128xf32, #tpu.memory_space<vmem>>, vector<64x128xf32>
    tpu.vector_store %arg8[%c0_24, %c0_25], %39 {strides = array<i32>} : memref<64x128xf32, #tpu.memory_space<vmem>>, vector<64x128xf32>,
    return
  }
  func.func @transform_0(%arg0: i32) -> (i32, i32) {
    %c0_i32 = arith.constant 0 : i32
    %c0_i32_0 = arith.constant 0 : i32
    return %arg0, %c0_i32 : i32, i32
  }
  func.func @transform_1(%arg0: i32) -> (i32, i32) {
    %c0_i32 = arith.constant 0 : i32
    %c0_i32_0 = arith.constant 0 : i32
    return %arg0, %c0_i32 : i32, i32
  }
  func.func @transform_2(%arg0: i32) -> (i32, i32) {
    %c0_i32 = arith.constant 0 : i32
    %c0_i32_0 = arith.constant 0 : i32
    %c0_i32_1 = arith.constant 0 : i32
    return %c0_i32, %c0_i32_0 : i32, i32
  }
  func.func @transform_3(%arg0: i32) -> (i32, i32) {
    %c0_i32 = arith.constant 0 : i32
    %c0_i32_0 = arith.constant 0 : i32
    %c0_i32_1 = arith.constant 0 : i32
    return %c0_i32, %c0_i32_0 : i32, i32
  }
  func.func @transform_4(%arg0: i32) -> (i32, i32) {
    %c0_i32 = arith.constant 0 : i32
    %c0_i32_0 = arith.constant 0 : i32
    %c0_i32_1 = arith.constant 0 : i32
    return %c0_i32, %c0_i32_0 : i32, i32
  }
  func.func @transform_5(%arg0: i32) -> (i32, i32) {
    %c0_i32 = arith.constant 0 : i32
    %c0_i32_0 = arith.constant 0 : i32
    %c0_i32_1 = arith.constant 0 : i32
    return %c0_i32, %c0_i32_0 : i32, i32
  }
  func.func @transform_6(%arg0: i32) -> (i32, i32) {
    %c0_i32 = arith.constant 0 : i32
    %c0_i32_0 = arith.constant 0 : i32
    %c0_i32_1 = arith.constant 0 : i32
    return %c0_i32, %c0_i32_0 : i32, i32
  }
  func.func @transform_7(%arg0: i32) -> (i32, i32) {
    %c0_i32 = arith.constant 0 : i32
    %c0_i32_0 = arith.constant 0 : i32
    return %arg0, %c0_i32 : i32, i32
  }
}

</mosaic_0001>

<bundles_post_ra>
// kernel: tpu_custom_call.1
= control target key start
LH: loop header
LB: loop body
LE: loop exit
PB: predicated region body
PF: predicated region fallthrough
CT: control target
= control target key end

     0   :  { %12 = vsyncpa [#allocation3], 0  ;;  %s1418_s0 = inlined_call_operand.hbm [shape: f32[64,128], index: 0, kind: input, shape index: {}]   ;;  %s1419_s1 = inlined_call_operand.hbm [shape: bf16[64,64], index: 1, kind: input, shape index: {}]   ;;  %s1420_s2 = inlined_call_operand.hbm [shape: bf16[128,128], index: 2, kind: input, shape index: {}]   ;;  %s1421_s3 = inlined_call_operand.hbm [shape: bf16[128,128], index: 3, kind: input, shape index: {}]   ;;  %s1422_s4 = inlined_call_operand.hbm [shape: bf16[128,128], index: 4, kind: input, shape index: {}]   ;;  %s1423_s5 = inlined_call_operand.hbm [shape: bf16[64,128], index: 5, kind: input, shape index: {}]   ;;  %s1424_s6 = inlined_call_operand.vmem [shape: f32[4,128], index: 6, kind: input, shape index: {}]   ;;  %s1425_s7 = inlined_call_operand.hbm [shape: f32[64,128], index: 7, kind: output, shape index: {}]  }
   0x1   :  { %13 = vsyncpa [#allocation6], 0 }
   0x2   :  { %14 = vsyncpa [#allocation9], 0 }
   0x3   :  { %15 = vsyncpa [#allocation12], 0 }
   0x4   :  { %16 = vsyncpa [#allocation4], 0  ;;  %s1218_s24 = smov [#allocation5]   ;;  %s1054_s28 = scalar_lea.hbm %s1419_s1, 512 }
   0x5   :  { %s34_s25 = sshll.u32 %s1218_s24, 4  ;;  %p1055_p0 = scmp.ne.s32.totalorder %s1419_s1, %s1054_s28  ;;  %s35_s25 = int_to_ptr.vmem [resolvable:$true] %s34_s25 }
   0x6   :  { %p1058_p1 = scmp.lt.u32.totalorder %s1054_s28, %s1419_s1 }
   0x8   :  { %p1060_p2 = pnand %p1058_p1, %p1055_p0 }
   0xa   :  { %1063 = shalt.err (!%p1060_p2)
}
   0xb   :  { %s1064_s10 = scalar_lea.vmem %s35_s25, 512  ;;  %p1069_p4 = scmp.lt.s32.totalorder %s35_s25, %s35_s25 }
   0xc   :  { %p1065_p3 = scmp.ne.s32.totalorder %s35_s25, %s1064_s10  ;;  %p1070_p5 = scmp.lt.s32.totalorder %s1064_s10, %s1064_s10 }
   0xe   :  { %p1071_p6 = por %p1070_p5, %p1069_p4 }
  0x10   :  { %p1072_p7 = pnand %p1071_p6, %p1065_p3 }
  0x12   :  { %1075 = shalt.err (!%p1072_p7)
}
  0x13   :  { %s1219_s11 = smov 64   ;;  %s1220_s12 = smov 4  }
  0x14   :  { %40 = dma.hbm_to_vmem [thread:$0]  %s1419_s1, 512, %s35_s25, [#allocation6], %s1219_s11, %s1219_s11, %s1220_s12  }
  0x15   :  { %s1221_s15 = smov [#allocation8]   ;;  %s1222_s17 = smov [#allocation2]  }
  0x16   :  { %s58_s16 = sshll.u32 %s1221_s15, 4  ;;  %s22_s18 = sshll.u32 %s1222_s17, 4  ;;  %s59_s16 = int_to_ptr.vmem [resolvable:$true] %s58_s16  ;;  %s23_s18 = int_to_ptr.vmem [resolvable:$true] %s22_s18 }
  0x17   :  { %s1076_s21 = scalar_lea.hbm %s1421_s3, 1024 }
  0x18   :  { %p1077_p8 = scmp.ne.s32.totalorder %s1421_s3, %s1076_s21  ;;  %p1080_p9 = scmp.lt.u32.totalorder %s1076_s21, %s1421_s3 }
  0x1a   :  { %p1082_p10 = pnand %p1080_p9, %p1077_p8 }
  0x1c   :  { %1085 = shalt.err (!%p1082_p10)
}
  0x1d   :  { %s1086_s1 = scalar_lea.vmem %s59_s16, 1024  ;;  %p1091_p12 = scmp.lt.s32.totalorder %s59_s16, %s59_s16 }
  0x1e   :  { %p1087_p11 = scmp.ne.s32.totalorder %s59_s16, %s1086_s1  ;;  %p1092_p13 = scmp.lt.s32.totalorder %s1086_s1, %s1086_s1 }
  0x20   :  { %p1093_p0 = por %p1092_p13, %p1091_p12 }
  0x22   :  { %p1094_p1 = pnand %p1093_p0, %p1087_p11 }
  0x24   :  { %1097 = shalt.err (!%p1094_p1)
}
  0x25   :  { %64 = dma.hbm_to_vmem [thread:$0]  %s1421_s3, 1024, %s59_s16, [#allocation9], %s1219_s11, %s1219_s11, %s1220_s12  }
  0x26   :  { %s1098_s30 = scalar_lea.hbm %s1418_s0, 1024 }
  0x27   :  { %p1099_p2 = scmp.ne.s32.totalorder %s1418_s0, %s1098_s30  ;;  %p1102_p3 = scmp.lt.u32.totalorder %s1098_s30, %s1418_s0 }
  0x29   :  { %p1104_p4 = pnand %p1102_p3, %p1099_p2 }
  0x2b   :  { %1107 = shalt.err (!%p1104_p4)
}
  0x2c   :  { %s1108_s14 = scalar_lea.vmem %s23_s18, 1024  ;;  %p1113_p6 = scmp.lt.s32.totalorder %s23_s18, %s23_s18 }
  0x2d   :  { %p1109_p5 = scmp.ne.s32.totalorder %s23_s18, %s1108_s14  ;;  %p1114_p7 = scmp.lt.s32.totalorder %s1108_s14, %s1108_s14 }
  0x2f   :  { %p1115_p8 = por %p1114_p7, %p1113_p6 }
  0x31   :  { %p1116_p9 = pnand %p1115_p8, %p1109_p5 }
  0x33   :  { %1119 = shalt.err (!%p1116_p9)
}
  0x34   :  { %s1223_s3 = smov 128   ;;  %s1224_s15 = smov 8  }
  0x35   :  { %28 = dma.hbm_to_vmem [thread:$0]  %s1418_s0, 1024, %s23_s18, [#allocation3], %s1223_s3, %s1223_s3, %s1224_s15  }
  0x36   :  { %s1225_s19 = smov [#allocation7]   ;;  %s1226_s21 = smov [#allocation10]  }
  0x37   :  { %s46_s20 = sshll.u32 %s1225_s19, 4  ;;  %s70_s22 = sshll.u32 %s1226_s21, 4  ;;  %s47_s20 = int_to_ptr.vmem [resolvable:$true] %s46_s20  ;;  %s71_s22 = int_to_ptr.vmem [resolvable:$true] %s70_s22 }
  0x38   :  { %s1120_s26 = scalar_lea.hbm %s1420_s2, 1024 }
  0x39   :  { %p1121_p10 = scmp.ne.s32.totalorder %s1420_s2, %s1120_s26  ;;  %p1124_p11 = scmp.lt.u32.totalorder %s1120_s26, %s1420_s2 }
  0x3b   :  { %p1126_p12 = pnand %p1124_p11, %p1121_p10 }
  0x3d   :  { %1129 = shalt.err (!%p1126_p12)
}
  0x3e   :  { %s1130_s0 = scalar_lea.vmem %s47_s20, 1024  ;;  %p1135_p0 = scmp.lt.s32.totalorder %s47_s20, %s47_s20 }
  0x3f   :  { %p1131_p13 = scmp.ne.s32.totalorder %s47_s20, %s1130_s0  ;;  %p1136_p1 = scmp.lt.s32.totalorder %s1130_s0, %s1130_s0 }
  0x41   :  { %p1137_p2 = por %p1136_p1, %p1135_p0 }
  0x43   :  { %p1138_p3 = pnand %p1137_p2, %p1131_p13 }
  0x45   :  { %1141 = shalt.err (!%p1138_p3)
}
  0x46   :  { %52 = dma.hbm_to_vmem [thread:$0]  %s1420_s2, 1024, %s47_s20, [#allocation6], %s1219_s11, %s1219_s11, %s1220_s12  }
  0x47   :  { %s1142_s9 = scalar_lea.hbm %s1422_s4, 1024 }
  0x48   :  { %p1143_p4 = scmp.ne.s32.totalorder %s1422_s4, %s1142_s9  ;;  %p1146_p5 = scmp.lt.u32.totalorder %s1142_s9, %s1422_s4 }
  0x4a   :  { %p1148_p6 = pnand %p1146_p5, %p1143_p4 }
  0x4c   :  { %1151 = shalt.err (!%p1148_p6)
}
  0x4d   :  { %s1152_s17 = scalar_lea.vmem %s71_s22, 1024  ;;  %p1157_p8 = scmp.lt.s32.totalorder %s71_s22, %s71_s22 }
  0x4e   :  { %p1153_p7 = scmp.ne.s32.totalorder %s71_s22, %s1152_s17  ;;  %p1158_p9 = scmp.lt.s32.totalorder %s1152_s17, %s1152_s17 }
  0x50   :  { %p1159_p10 = por %p1158_p9, %p1157_p8 }
  0x52   :  { %p1160_p11 = pnand %p1159_p10, %p1153_p7 }
  0x54   :  { %1163 = shalt.err (!%p1160_p11)
}
  0x55   :  { %76 = dma.hbm_to_vmem [thread:$0]  %s1422_s4, 1024, %s71_s22, [#allocation9], %s1219_s11, %s1219_s11, %s1220_s12  }
  0x56   :  { %s1227_s20 = smov [#allocation11]   ;;  %s1164_s26 = scalar_lea.hbm %s1423_s5, 512 }
  0x57   :  { %s82_s21 = sshll.u32 %s1227_s20, 4  ;;  %p1165_p12 = scmp.ne.s32.totalorder %s1423_s5, %s1164_s26  ;;  %s83_s21 = int_to_ptr.vmem [resolvable:$true] %s82_s21 }
  0x58   :  { %p1168_p13 = scmp.lt.u32.totalorder %s1164_s26, %s1423_s5 }
  0x5a   :  { %p1170_p0 = pnand %p1168_p13, %p1165_p12 }
  0x5c   :  { %1173 = shalt.err (!%p1170_p0)
}
  0x5d   :  { %s1174_s0 = scalar_lea.vmem %s83_s21, 512  ;;  %p1179_p2 = scmp.lt.s32.totalorder %s83_s21, %s83_s21 }
  0x5e   :  { %p1175_p1 = scmp.ne.s32.totalorder %s83_s21, %s1174_s0  ;;  %p1180_p3 = scmp.lt.s32.totalorder %s1174_s0, %s1174_s0 }
  0x60   :  { %p1181_p4 = por %p1180_p3, %p1179_p2 }
  0x62   :  { %p1182_p5 = pnand %p1181_p4, %p1175_p1 }
  0x64   :  { %1185 = shalt.err (!%p1182_p5)
}
  0x65   :  { %88 = dma.hbm_to_vmem [thread:$0]  %s1423_s5, 512, %s83_s21, [#allocation12], %s1219_s11, %s1219_s11, %s1220_s12  }
  0x66   :  { %1208 = dma.done.wait [#allocation3], 1024  }
  0x67   :  { %1209 = vsyncadd [#allocation3], 4294966272 }
  0x68   :  { %1210 = dma.done.wait [#allocation6], 1536  }
  0x69   :  { %1211 = vsyncadd [#allocation6], 4294965760 }
  0x6a   :  { %1212 = dma.done.wait [#allocation9], 2048  }
  0x6b   :  { %1213 = vsyncadd [#allocation9], 4294965248 }
  0x6c   :  { %1214 = dma.done.wait [#allocation12], 512  }
  0x6d   :  { %1215 = vsyncadd [#allocation12], 4294966784  ;;  %v990_v0 = vld [vmem:[#allocation7] sm:$0xff]   ;;  %v991_v1 = vld [vmem:[#allocation7 + $0x8] sm:$0xff]   ;;  %vm613_vm0 = vcmask 523264  }
  0x6e   :  { %891 = vmatprep.subr.bf16.mxu0 %v990_v0  ;;  %v992_v2 = vld [vmem:[#allocation7 + $0x10] sm:$0xff]   ;;  %v993_v3 = vld [vmem:[#allocation7 + $0x18] sm:$0xff]   ;;  %v1359_v4 = vld [vmem:[#allocation2] sm:$0xff] }
  0x6f   :  { %892 = vmatpush3.bf16.msra.mxu0 %v990_v0  ;;  %v1361_v5 = vld [vmem:[#allocation2 + $0x8] sm:$0xff]  ;;  %v994_v7 = vld [vmem:[#allocation7 + $0x20] sm:$0xff]   ;;  %v1000_v10 = vld [vmem:[#allocation8 + $0x10] sm:$0xff]  }
  0x70   :  { %893 = vmatprep.subr.bf16.mxu0 %v991_v1  ;;  %v122_v6 = vpack.c.bf16 %v1361_v5, %v1359_v4  ;;  %v998_v8 = vld [vmem:[#allocation8] sm:$0xff]   ;;  %v999_v9 = vld [vmem:[#allocation8 + $0x8] sm:$0xff]   ;;  %v1001_v12 = vld [vmem:[#allocation8 + $0x18] sm:$0xff]  }
  0x71   :  { %915 = vmatprep.subr.bf16.mxu1 %v998_v8  ;;  %v995_v11 = vld [vmem:[#allocation7 + $0x28] sm:$0xff]   ;;  %v996_v13 = vld [vmem:[#allocation7 + $0x30] sm:$0xff]   ;;  %v1002_v14 = vld [vmem:[#allocation8 + $0x20] sm:$0xff]  }
  0x72   :  { %907 = vmatprep.mubr.bf16.mxu0 %v122_v6  ;;  %916 = vmatpush3.bf16.msra.mxu1 %v998_v8  ;;  %v997_v15 = vld [vmem:[#allocation7 + $0x38] sm:$0xff]   ;;  %v1365_v16 = vld [vmem:[#allocation2 + $0x10] sm:$0xff]  ;;  %v1003_v18 = vld [vmem:[#allocation8 + $0x28] sm:$0xff]  }
  0x73   :  { %894 = vmatpush3.bf16.msra.mxu0 %v991_v1  ;;  %917 = vmatprep.subr.bf16.mxu1 %v999_v9  ;;  %v1367_v17 = vld [vmem:[#allocation2 + $0x18] sm:$0xff]  ;;  %v1369_v19 = vld [vmem:[#allocation2 + $0x20] sm:$0xff]  ;;  %v1371_v20 = vld [vmem:[#allocation2 + $0x28] sm:$0xff] }
  0x74   :  { %895 = vmatprep.subr.bf16.mxu0 %v992_v2  ;;  %v123_v21 = vpack.c.bf16 %v1367_v17, %v1365_v16  ;;  %v124_v22 = vpack.c.bf16 %v1371_v20, %v1369_v19  ;;  %v1377_v23 = vld [vmem:[#allocation2 + $0x30] sm:$0xff]  ;;  %v1379_v24 = vld [vmem:[#allocation2 + $0x38] sm:$0xff]  ;;  %v1006_v28 = vld [vmem:[#allocation11] sm:$0xff]  }
  0x75   :  { %v125_v25 = vpack.c.bf16 %v1379_v24, %v1377_v23  ;;  %v1004_v26 = vld [vmem:[#allocation8 + $0x30] sm:$0xff]   ;;  %v1005_v27 = vld [vmem:[#allocation8 + $0x38] sm:$0xff]   ;;  %v1010_v29 = vld [vmem:[#allocation10] sm:$0xff]  }
  0x76   :  { %918 = vmatpush3.bf16.msra.mxu1 %v999_v9  ;;  %v1013_v30 = vld [vmem:[#allocation10 + $0x8] sm:$0xff]   ;;  %v1014_v31 = vld [vmem:[#allocation10 + $0x10] sm:$0xff]   ;;  %v1017_v32 = vld [vmem:[#allocation10 + $0x18] sm:$0xff]  }
  0x77   :  { %896 = vmatpush3.bf16.msra.mxu0 %v992_v2  ;;  %919 = vmatprep.subr.bf16.mxu1 %v1000_v10  ;;  %v1018_v33 = vld [vmem:[#allocation10 + $0x20] sm:$0xff]   ;;  %v1019_v34 = vld [vmem:[#allocation10 + $0x28] sm:$0xff]   ;;  %v1008_v61 = vld [vmem:[#allocation11 + $0x10] sm:$0xff]  }
  0x78   :  { %897 = vmatprep.subr.bf16.mxu0 %v993_v3  ;;  %v799_v35 = vld [vmem:[%s1424_s6] ss:$0 sm:$0xff]  ;;  %v1007_v53 = vld [vmem:[#allocation11 + $0x8] sm:$0xff]   ;;  %v1016_v8 = vld [vmem:[#allocation5 + $0x18] sm:$0xff]  }
  0x79   :  { %v1011_v2 = vld [vmem:[#allocation5] sm:$0xff]   ;;  %v1012_v6 = vld [vmem:[#allocation5 + $0x8] sm:$0xff]   ;;  %v1020_v9 = vld [vmem:[#allocation10 + $0x30] sm:$0xff]  }
  0x7a   :  { %920 = vmatpush3.bf16.msra.mxu1 %v1000_v10  ;;  %v1021_v10 = vld [vmem:[#allocation10 + $0x38] sm:$0xff]  }
  0x7b   :  { %898 = vmatpush3.bf16.msra.mxu0 %v993_v3  ;;  %921 = vmatprep.subr.bf16.mxu1 %v1001_v12  ;;  %v1009_v3 = vld [vmem:[#allocation11 + $0x18] sm:$0xff]  }
  0x7c   :  { %899 = vmatprep.subr.bf16.mxu0 %v994_v7 }
  0x7e   :  { %922 = vmatpush3.bf16.msra.mxu1 %v1001_v12 }
  0x7f   :  { %900 = vmatpush3.bf16.msra.mxu0 %v994_v7  ;;  %923 = vmatprep.subr.bf16.mxu1 %v1002_v14  ;;  %v1015_v7 = vld [vmem:[#allocation5 + $0x10] sm:$0xff]  }
  0x80   :  { %901 = vmatprep.subr.bf16.mxu0 %v995_v11 }
  0x82   :  { %924 = vmatpush3.bf16.msra.mxu1 %v1002_v14 }
  0x83   :  { %902 = vmatpush3.bf16.msra.mxu0 %v995_v11  ;;  %925 = vmatprep.subr.bf16.mxu1 %v1003_v18  ;;  %v808_v11 = vld [vmem:[%s1424_s6 + $0x1] ss:$0 sm:$0xff] }
  0x84   :  { %903 = vmatprep.subr.bf16.mxu0 %v996_v13 }
  0x86   :  { %926 = vmatpush3.bf16.msra.mxu1 %v1003_v18 }
  0x87   :  { %904 = vmatpush3.bf16.msra.mxu0 %v996_v13  ;;  %927 = vmatprep.subr.bf16.mxu1 %v1004_v26 }
  0x88   :  { %905 = vmatprep.subr.bf16.mxu0 %v997_v15 }
  0x8a   :  { %928 = vmatpush3.bf16.msra.mxu1 %v1004_v26 }
  0x8b   :  { %906 = vmatpush3.bf16.msra.mxu0 %v997_v15  ;;  %929 = vmatprep.subr.bf16.mxu1 %v1005_v27 }
  0x8c   :  { %939 = vmatprep.subr.bf16.mxu0 %v1010_v29 }
  0x8e   :  { %908 = vmatmul.mubr.bf16.vlgmr.msra.gmra.mrb[0].mxu0 %v123_v21  ;;  %930 = vmatpush3.bf16.msra.mxu1 %v1005_v27 }
  0x8f   :  { %911 = vmatprep.mubr.bf16.mxu0 %v124_v22  ;;  %963 = vmatprep.subr.bf16.mxu1 %v1006_v28 }
  0x90   :  { %940 = vmatpush3.bf16.msra.mxu0 %v1010_v29 }
  0x91   :  { %941 = vmatprep.subr.bf16.mxu0 %v1013_v30 }
  0x94   :  { %942 = vmatpush3.bf16.msra.mxu0 %v1013_v30 }
  0x95   :  { %943 = vmatprep.subr.bf16.mxu0 %v1014_v31 }
  0x96   :  { %912 = vmatmul.mubr.bf16.gmra.mrb[4].mxu0 %v125_v25 }
  0x98   :  { %944 = vmatpush3.bf16.msra.mxu0 %v1014_v31 }
  0x99   :  { %945 = vmatprep.subr.bf16.mxu0 %v1017_v32 }
  0x9c   :  { %946 = vmatpush3.bf16.msra.mxu0 %v1017_v32 }
  0x9d   :  { %947 = vmatprep.subr.bf16.mxu0 %v1018_v33 }
  0xa0   :  { %948 = vmatpush3.bf16.msra.mxu0 %v1018_v33 }
  0xa1   :  { %949 = vmatprep.subr.bf16.mxu0 %v1019_v34 }
  0xa4   :  { %950 = vmatpush3.bf16.msra.mxu0 %v1019_v34 }
  0xa5   :  { %951 = vmatprep.subr.bf16.mxu0 %v1020_v9 }
  0xa8   :  { %952 = vmatpush3.bf16.msra.mxu0 %v1020_v9 }
  0xa9   :  { %953 = vmatprep.subr.bf16.mxu0 %v1021_v10 }
  0xac   :  { %954 = vmatpush3.bf16.msra.mxu0 %v1021_v10 }
 0x161   :  { %v909_v36 = vpop.f32.mrb[0].mxu0 }
 0x162   :  { %v237_v37 = vadd.f32 %v909_v36, %v799_v35  ;;  %v228_v38 = vpop.f32.mrb[1].mxu0 }
 0x163   :  { %v229_v39 = vadd.f32 %v799_v35, %v228_v38  ;;  %v910_v40 = vpop.f32.mrb[2].mxu0 }
 0x164   :  { %v240_v41 = vadd.f32 %v910_v40, %v799_v35  ;;  %v231_v42 = vpop.f32.mrb[3].mxu0  ;;  %v261_v44 = vmax.f32 %v237_v37, 0.0 }
 0x165   :  { %v232_v43 = vadd.f32 %v799_v35, %v231_v42  ;;  %v259_v46 = vmax.f32 %v229_v39, 0.0 }
 0x166   :  { %v262_v45 = vmax.f32 %v240_v41, 0.0 }
 0x167   :  { %v260_v47 = vmax.f32 %v232_v43, 0.0 }
 0x168   :  { %v268_v48 = vpack.c.bf16 %v262_v45, %v261_v44 }
 0x169   :  { %v913_v49 = vpop.f32.mrb[4].mxu0  ;;  %v267_v50 = vpack.c.bf16 %v260_v47, %v259_v46 }
 0x16a   :  { %v253_v51 = vadd.f32 %v913_v49, %v799_v35  ;;  %v244_v52 = vpop.f32.mrb[5].mxu0 }
 0x16b   :  { %v245_v54 = vadd.f32 %v799_v35, %v244_v52  ;;  %v914_v55 = vpop.f32.mrb[6].mxu0  ;;  %931 = vmatprep.mubr.bf16.mxu1 %v267_v50 }
 0x16c   :  { %v256_v56 = vadd.f32 %v914_v55, %v799_v35  ;;  %v247_v57 = vpop.f32.mrb[7].mxu0  ;;  %932 = vmatmul.mubr.bf16.vlgmr.msra.gmra.mrb[0].mxu1 %v268_v48  ;;  %v265_v59 = vmax.f32 %v253_v51, 0.0 }
 0x16d   :  { %v248_v58 = vadd.f32 %v799_v35, %v247_v57  ;;  %964 = vmatpush3.bf16.msra.mxu1 %v1006_v28  ;;  %v263_v62 = vmax.f32 %v245_v54, 0.0  ;;  %v826_v54 = vld [vmem:[%s1424_s6 + $0x3] ss:$0 sm:$0xff] }
 0x16e   :  { %v266_v60 = vmax.f32 %v256_v56, 0.0  ;;  %965 = vmatprep.subr.bf16.mxu1 %v1007_v53 }
 0x16f   :  { %v264_v63 = vmax.f32 %v248_v58, 0.0 }
 0x170   :  { %v270_v0 = vpack.c.bf16 %v266_v60, %v265_v59 }
 0x171   :  { %v269_v1 = vpack.c.bf16 %v264_v63, %v263_v62  ;;  %966 = vmatpush3.bf16.msra.mxu1 %v1007_v53 }
 0x172   :  { %967 = vmatprep.subr.bf16.mxu1 %v1008_v61 }
 0x173   :  { %935 = vmatprep.mubr.bf16.mxu1 %v269_v1 }
 0x174   :  { %936 = vmatmul.mubr.bf16.gmra.mrb[4].mxu1 %v270_v0 }
 0x175   :  { %968 = vmatpush3.bf16.msra.mxu1 %v1008_v61  ;;  %971 = vmatprep.mubr.msk.bf16.mxu1 %vm613_vm0, %v1011_v2 }
 0x176   :  { %969 = vmatprep.subr.bf16.mxu1 %v1009_v3 }
 0x179   :  { %970 = vmatpush3.bf16.msra.mxu1 %v1009_v3 }
 0x17c   :  { %972 = vmatmul.mubr.msk.bf16.vlgmr.msra.gmra.mrb[8].mxu1 %vm613_vm0, %v1012_v6 }
 0x17d   :  { %975 = vmatprep.mubr.msk.bf16.mxu1 %vm613_vm0, %v1015_v7 }
 0x184   :  { %976 = vmatmul.mubr.msk.bf16.gmra.mrb[12].mxu1 %vm613_vm0, %v1016_v8 }
 0x23f   :  { %v933_v12 = vpop.f32.mrb[0].mxu1 }
 0x240   :  { %v382_v13 = vadd.f32 %v933_v12, %v808_v11  ;;  %v373_v14 = vpop.f32.mrb[1].mxu1 }
 0x241   :  { %v374_v15 = vadd.f32 %v808_v11, %v373_v14  ;;  %v934_v18 = vpop.f32.mrb[2].mxu1 }
 0x242   :  { %v385_v21 = vadd.f32 %v934_v18, %v808_v11  ;;  %v376_v22 = vpop.f32.mrb[3].mxu1  ;;  %v406_v26 = vmax.f32 %v382_v13, 0.0 }
 0x243   :  { %v377_v25 = vadd.f32 %v808_v11, %v376_v22  ;;  %v404_v28 = vmax.f32 %v374_v15, 0.0 }
 0x244   :  { %v407_v27 = vmax.f32 %v385_v21, 0.0 }
 0x245   :  { %v405_v29 = vmax.f32 %v377_v25, 0.0 }
 0x246   :  { %v413_v30 = vpack.c.bf16 %v407_v27, %v406_v26 }
 0x247   :  { %v412_v31 = vpack.c.bf16 %v405_v29, %v404_v28  ;;  %v937_v32 = vpop.f32.mrb[4].mxu1 }
 0x248   :  { %v398_v33 = vadd.f32 %v937_v32, %v808_v11  ;;  %v389_v34 = vpop.f32.mrb[5].mxu1 }
 0x249   :  { %v390_v35 = vadd.f32 %v808_v11, %v389_v34  ;;  %v938_v36 = vpop.f32.mrb[6].mxu1  ;;  %955 = vmatprep.mubr.bf16.mxu0 %v412_v31 }
 0x24a   :  { %v401_v37 = vadd.f32 %v938_v36, %v808_v11  ;;  %v392_v38 = vpop.f32.mrb[7].mxu1  ;;  %956 = vmatmul.mubr.bf16.vlgmr.msra.gmra.mrb[8].mxu0 %v413_v30  ;;  %v410_v40 = vmax.f32 %v398_v33, 0.0  ;;  %v817_v33 = vld [vmem:[%s1424_s6 + $0x2] ss:$0 sm:$0xff]  ;;  %s1228_s6 = smov [#allocation13]  }
 0x24b   :  { %v393_v39 = vadd.f32 %v808_v11, %v392_v38  ;;  %v408_v42 = vmax.f32 %v390_v35, 0.0  ;;  %s784_s10 = sshll.u32 %s1228_s6, 4  ;;  %s785_s10 = int_to_ptr.vmem [resolvable:$true] %s784_s10 }
 0x24c   :  { %v411_v41 = vmax.f32 %v401_v37, 0.0  ;;  %s1186_s13 = scalar_lea.vmem %s785_s10, 1024  ;;  %p1191_p7 = scmp.lt.s32.totalorder %s785_s10, %s785_s10 }
 0x24d   :  { %v409_v43 = vmax.f32 %v393_v39, 0.0  ;;  %p1187_p6 = scmp.ne.s32.totalorder %s785_s10, %s1186_s13  ;;  %p1192_p8 = scmp.lt.s32.totalorder %s1186_s13, %s1186_s13 }
 0x24e   :  { %v415_v44 = vpack.c.bf16 %v411_v41, %v410_v40 }
 0x24f   :  { %v414_v45 = vpack.c.bf16 %v409_v43, %v408_v42  ;;  %v973_v46 = vpop.f32.mrb[8].mxu1  ;;  %p1193_p9 = por %p1192_p8, %p1191_p7 }
 0x250   :  { %v660_v47 = vpop.f32.mrb[9].mxu1  ;;  %v669_v55 = vadd.f32 %v973_v46, %v826_v54 }
 0x251   :  { %959 = vmatprep.mubr.bf16.mxu0 %v414_v45  ;;  %v974_v48 = vpop.f32.mrb[10].mxu1  ;;  %v661_v56 = vadd.f32 %v826_v54, %v660_v47  ;;  %p1194_p10 = pnand %p1193_p9, %p1187_p6 }
 0x252   :  { %960 = vmatmul.mubr.bf16.gmra.mrb[12].mxu0 %v415_v44  ;;  %v663_v49 = vpop.f32.mrb[11].mxu1  ;;  %v841_v57 = vmul.f32 -1.442695, %v669_v55  ;;  %v672_v58 = vadd.f32 %v974_v48, %v826_v54 }
 0x253   :  { %v839_v59 = vmul.f32 -1.442695, %v661_v56  ;;  %v664_v60 = vadd.f32 %v826_v54, %v663_v49 }
 0x254   :  { %1022 = vpow2.f32 %v841_v57  ;;  %v842_v61 = vmul.f32 -1.442695, %v672_v58 }
 0x255   :  { %1024 = vpow2.f32 %v839_v59  ;;  %v840_v63 = vmul.f32 -1.442695, %v664_v60 }
 0x256   :  { %1026 = vpow2.f32 %v842_v61 }
 0x257   :  { %v977_v50 = vpop.f32.mrb[12].mxu1  ;;  %1028 = vpow2.f32 %v840_v63 }
 0x258   :  { %v676_v51 = vpop.f32.mrb[13].mxu1  ;;  %v685_v62 = vadd.f32 %v977_v50, %v826_v54 }
 0x259   :  { %v978_v52 = vpop.f32.mrb[14].mxu1  ;;  %v677_v0 = vadd.f32 %v826_v54, %v676_v51 }
 0x25a   :  { %v679_v53 = vpop.f32.mrb[15].mxu1  ;;  %v845_v1 = vmul.f32 -1.442695, %v685_v62  ;;  %v688_v2 = vadd.f32 %v978_v52, %v826_v54 }
 0x25b   :  { %v843_v3 = vmul.f32 -1.442695, %v677_v0  ;;  %v680_v6 = vadd.f32 %v826_v54, %v679_v53 }
 0x25c   :  { %1030 = vpow2.f32 %v845_v1  ;;  %v846_v7 = vmul.f32 -1.442695, %v688_v2 }
 0x25d   :  { %1032 = vpow2.f32 %v843_v3  ;;  %v844_v8 = vmul.f32 -1.442695, %v680_v6 }
 0x25e   :  { %v1023_v9 = vpop.eup %1022  ;;  %1034 = vpow2.f32 %v846_v7 }
 0x25f   :  { %v1025_v10 = vpop.eup %1024  ;;  %v717_v11 = vadd.f32 1.0, %v1023_v9  ;;  %1036 = vpow2.f32 %v844_v8 }
 0x260   :  { %v1027_v12 = vpop.eup %1026  ;;  %v715_v13 = vadd.f32 1.0, %v1025_v10 }
 0x261   :  { %v1029_v14 = vpop.eup %1028  ;;  %1038 = vrcp.f32 %v717_v11  ;;  %v718_v15 = vadd.f32 1.0, %v1027_v12 }
 0x262   :  { %1040 = vrcp.f32 %v715_v13  ;;  %v716_v21 = vadd.f32 1.0, %v1029_v14 }
 0x263   :  { %1042 = vrcp.f32 %v718_v15 }
 0x264   :  { %1044 = vrcp.f32 %v716_v21 }
 0x266   :  { %v1031_v18 = vpop.eup %1030 }
 0x267   :  { %v1033_v22 = vpop.eup %1032  ;;  %v721_v25 = vadd.f32 1.0, %v1031_v18 }
 0x268   :  { %v1035_v26 = vpop.eup %1034  ;;  %v719_v27 = vadd.f32 1.0, %v1033_v22 }
 0x269   :  { %v1037_v28 = vpop.eup %1036  ;;  %1046 = vrcp.f32 %v721_v25  ;;  %v722_v29 = vadd.f32 1.0, %v1035_v26 }
 0x26a   :  { %1048 = vrcp.f32 %v719_v27  ;;  %v720_v30 = vadd.f32 1.0, %v1037_v28 }
 0x26b   :  { %v1039_v31 = vpop.eup %1038  ;;  %1050 = vrcp.f32 %v722_v29 }
 0x26c   :  { %v1041_v32 = vpop.eup %1040  ;;  %1052 = vrcp.f32 %v720_v30  ;;  %v741_v34 = vadd.f32 1.0, %v1039_v31 }
 0x26d   :  { %v1043_v35 = vpop.eup %1042  ;;  %v739_v37 = vadd.f32 1.0, %v1041_v32 }
 0x26e   :  { %v1045_v38 = vpop.eup %1044  ;;  %v742_v45 = vadd.f32 1.0, %v1043_v35 }
 0x26f   :  { %v740_v50 = vadd.f32 1.0, %v1045_v38 }
 0x273   :  { %v1047_v47 = vpop.eup %1046 }
 0x274   :  { %v1049_v51 = vpop.eup %1048  ;;  %v745_v58 = vadd.f32 1.0, %v1047_v47 }
 0x275   :  { %v1051_v59 = vpop.eup %1050  ;;  %v743_v63 = vadd.f32 1.0, %v1049_v51 }
 0x276   :  { %v1053_v0 = vpop.eup %1052  ;;  %v746_v10 = vadd.f32 1.0, %v1051_v59 }
 0x277   :  { %v744_v13 = vadd.f32 1.0, %v1053_v0 }
 0x31d   :  { %v957_v36 = vpop.f32.mrb[8].mxu0 }
 0x31e   :  { %v527_v39 = vadd.f32 %v957_v36, %v817_v33  ;;  %v518_v40 = vpop.f32.mrb[9].mxu0 }
 0x31f   :  { %v519_v41 = vadd.f32 %v817_v33, %v518_v40  ;;  %v958_v42 = vpop.f32.mrb[10].mxu0 }
 0x320   :  { %v749_v43 = vmul.f32 %v741_v34, %v527_v39  ;;  %v530_v44 = vadd.f32 %v958_v42, %v817_v33  ;;  %v521_v46 = vpop.f32.mrb[11].mxu0 }
 0x321   :  { %v747_v48 = vmul.f32 %v739_v37, %v519_v41  ;;  %v522_v49 = vadd.f32 %v817_v33, %v521_v46 }
 0x322   :  { %v757_v52 = vmax.f32 %v749_v43, 0.0  ;;  %v750_v53 = vmul.f32 %v742_v45, %v530_v44 }
 0x323   :  { %v755_v54 = vmax.f32 %v747_v48, 0.0  ;;  %v748_v55 = vmul.f32 %v740_v50, %v522_v49 }
 0x324   :  { %v765_v56 = vadd.f32 %v757_v52, %v1365_v16  ;;  %v758_v57 = vmax.f32 %v750_v53, 0.0 }
 0x325   :  { %v763_v60 = vadd.f32 %v755_v54, %v1359_v4  ;;  %v756_v61 = vmax.f32 %v748_v55, 0.0  ;;  %v961_v62 = vpop.f32.mrb[12].mxu0 }
 0x326   :  { %773 = vst [vmem:[#allocation13 + $0x10] sm:$0xff] %v765_v56  ;;  %v766_v1 = vadd.f32 %v758_v57, %v1367_v17  ;;  %v543_v2 = vadd.f32 %v961_v62, %v817_v33  ;;  %v534_v3 = vpop.f32.mrb[13].mxu0 }
 0x327   :  { %771 = vst [vmem:[#allocation13] sm:$0xff] %v763_v60  ;;  %v764_v6 = vadd.f32 %v756_v61, %v1361_v5  ;;  %v535_v7 = vadd.f32 %v817_v33, %v534_v3  ;;  %v962_v8 = vpop.f32.mrb[14].mxu0 }
 0x328   :  { %774 = vst [vmem:[#allocation13 + $0x18] sm:$0xff] %v766_v1  ;;  %v753_v16 = vmul.f32 %v745_v58, %v543_v2  ;;  %v546_v9 = vadd.f32 %v962_v8, %v817_v33  ;;  %v537_v11 = vpop.f32.mrb[15].mxu0 }
 0x329   :  { %772 = vst [vmem:[#allocation13 + $0x8] sm:$0xff] %v764_v6  ;;  %v751_v4 = vmul.f32 %v743_v63, %v535_v7  ;;  %v538_v12 = vadd.f32 %v817_v33, %v537_v11 }
 0x32a   :  { %v761_v14 = vmax.f32 %v753_v16, 0.0  ;;  %v754_v15 = vmul.f32 %v746_v10, %v546_v9 }
 0x32b   :  { %v759_v18 = vmax.f32 %v751_v4, 0.0  ;;  %v752_v17 = vmul.f32 %v744_v13, %v538_v12 }
 0x32c   :  { %v769_v21 = vadd.f32 %v761_v14, %v1377_v23  ;;  %v762_v22 = vmax.f32 %v754_v15, 0.0 }
 0x32d   :  { %v767_v5 = vadd.f32 %v759_v18, %v1369_v19  ;;  %v760_v25 = vmax.f32 %v752_v17, 0.0 }
 0x32e   :  { %777 = vst [vmem:[#allocation13 + $0x30] sm:$0xff] %v769_v21  ;;  %v770_v26 = vadd.f32 %v762_v22, %v1379_v24 }
 0x32f   :  { %775 = vst [vmem:[#allocation13 + $0x20] sm:$0xff] %v767_v5  ;;  %v768_v27 = vadd.f32 %v760_v25, %v1371_v20 }
 0x330   :  { %778 = vst [vmem:[#allocation13 + $0x38] sm:$0xff] %v770_v26 }
 0x331   :  { %776 = vst [vmem:[#allocation13 + $0x28] sm:$0xff] %v768_v27 }
 0x332   :  { %1197 = shalt.err (!%p1194_p10)
}
 0x333   :  { %s1198_s17 = scalar_lea.hbm %s1425_s7, 1024 }
 0x334   :  { %p1199_p11 = scmp.ne.s32.totalorder %s1425_s7, %s1198_s17  ;;  %p1202_p12 = scmp.lt.u32.totalorder %s1198_s17, %s1425_s7 }
 0x336   :  { %p1204_p13 = pnand %p1202_p12, %p1199_p11 }
 0x338   :  { %1207 = shalt.err (!%p1204_p13)
}
 0x339   :  { %790 = dma.vmem_to_hbm [thread:$0]  %s785_s10, 1024, %s1425_s7, [#allocation4], %s1223_s3, %s1223_s3, %s1224_s15  }
 0x33a   :  { %1216 = dma.done.wait [#allocation4], 1024  }
 0x33b   :  { %1217 = vsyncadd [#allocation4], 4294966272 }
 0x33c   :  { %794 = vsyncpa [#allocation3], 1 }
 0x33d   :  { %795 = vsyncpa [#allocation6], 1 }
 0x33e   :  { %796 = vsyncpa [#allocation9], 1 }
 0x33f   :  { %797 = vsyncpa [#allocation12], 1 }
 0x340   :  { %798 = vsyncpa [#allocation4], 1 }

</bundles_post_ra>
